<compile_context>
chip_gen: v6e
topology: v6e:2x2x1
jax: 0.10.0
libtpu: 0.0.40
codegen_flags: <defaults>
</compile_context>

<pallas_src>
import math
import functools
from typing import NamedTuple

import jax
import jax.numpy as jnp
from jax.experimental import pallas as pl
from jax.experimental.pallas import tpu as pltpu

LN_EPS = 1e-5   # torch.nn.LayerNorm default
LANE = 128
SUBLANE = 8


def _round_up(x, m):
    return ((x + m - 1) // m) * m


class ActorParams(NamedTuple):
    """Raw parameters (weights stored pre-transposed as [in, out])."""
    w1: jax.Array
    b1: jax.Array
    g1: jax.Array
    be1: jax.Array
    w2: jax.Array
    b2: jax.Array
    g2: jax.Array
    be2: jax.Array
    w3: jax.Array
    b3: jax.Array


class PreparedActorParams(NamedTuple):
    """One-time prepared params: mu layer lane-padded to 128, weights in the
    chosen matmul dtype (f32 or bf16).  Built once, reused every forward."""
    w1: jax.Array
    b1: jax.Array
    g1: jax.Array
    be1: jax.Array
    w2: jax.Array
    b2: jax.Array
    g2: jax.Array
    be2: jax.Array
    w3p: jax.Array
    b3p: jax.Array


def prepare_actor_params(params: ActorParams, *, use_bf16_matmul: bool = False
                         ) -> PreparedActorParams:
    """One-time parameter prep -- do NOT call per forward step.

    * Zero-pads the mu layer to a multiple of 128 output lanes so its dot runs
      on full MXU lanes (the kernel stores only the real action columns).
    * Optionally casts the matmul weights to bf16 (f32 accumulation stays in
      the kernel); good on v5e/v6e/v7x, halves resident-weight VMEM & DMA.
    """
    w1, b1, g1, be1, w2, b2, g2, be2, w3, b3 = params
    fc2_dims, n_actions = w3.shape
    out_pad = _round_up(n_actions, LANE)

    w3p = jnp.zeros((fc2_dims, out_pad), jnp.float32).at[:, :n_actions].set(
        w3.astype(jnp.float32))
    b3p = jnp.zeros((1, out_pad), jnp.float32).at[:, :n_actions].set(
        b3.astype(jnp.float32))

    mm_dtype = jnp.bfloat16 if use_bf16_matmul else jnp.float32
    return PreparedActorParams(
        w1=w1.astype(mm_dtype),
        b1=b1.astype(jnp.float32),
        g1=g1.astype(jnp.float32),
        be1=be1.astype(jnp.float32),
        w2=w2.astype(mm_dtype),
        b2=b2.astype(jnp.float32),
        g2=g2.astype(jnp.float32),
        be2=be2.astype(jnp.float32),
        w3p=w3p.astype(mm_dtype),
        b3p=b3p,
    )


def _layernorm_f32(h, gamma, beta):
    # Biased variance, eps inside the rsqrt -> identical to torch.nn.LayerNorm.
    mean = jnp.mean(h, axis=-1, keepdims=True)
    centered = h - mean
    var = jnp.mean(centered * centered, axis=-1, keepdims=True)
    return centered * jax.lax.rsqrt(var + LN_EPS) * gamma + beta


def actor_kernel(
    x_ref,
    w1_ref, b1_ref, g1_ref, be1_ref,
    w2_ref, b2_ref, g2_ref, be2_ref,
    w3_ref, b3_ref,
    out_ref,
):
    # Hoist small f32 params once; rely on implicit [1, N] broadcast.
    b1 = b1_ref[...]
    g1 = g1_ref[...]
    be1 = be1_ref[...]
    b2 = b2_ref[...]
    g2 = g2_ref[...]
    be2 = be2_ref[...]
    b3 = b3_ref[...]

    mm_dtype = w1_ref.dtype          # f32 or bf16 MXU operands; f32 accumulate
    n_out = out_ref.shape[1]         # true n_actions (static)

    # State arrives f32 from HBM; cast to the matmul dtype in VMEM (no extra
    # wrapper-side cast pass over HBM).
    x = x_ref[...].astype(mm_dtype)

    # fc1 + LayerNorm + ReLU   (LN / ReLU in f32)
    h = jnp.dot(x, w1_ref[...], preferred_element_type=jnp.float32) + b1
    h = jnp.maximum(_layernorm_f32(h, g1, be1), 0.0)

    # fc2 + LayerNorm + ReLU
    h = jnp.dot(h.astype(mm_dtype), w2_ref[...],
                preferred_element_type=jnp.float32) + b2
    h = jnp.maximum(_layernorm_f32(h, g2, be2), 0.0)

    # mu + tanh.  mu weights are lane-padded to 128 for the MXU dot, but only
    # the real action columns are written out (no 32x write amplification).
    h = jnp.dot(h.astype(mm_dtype), w3_ref[...],
                preferred_element_type=jnp.float32) + b3
    out_ref[...] = jnp.tanh(h[:, :n_out]).astype(out_ref.dtype)


@functools.partial(jax.jit, static_argnames=("n_actions", "block_batch"))
def actor_forward(state, action, prepared: PreparedActorParams, n_actions,
                  *, block_batch=1024):
    """Actor forward as a single Pallas TPU kernel launch.

    state:    [B, input_dim] f32
    action:   unused (matches the PyTorch forward signature)
    prepared: PreparedActorParams from prepare_actor_params (one-time prep)
    n_actions: true number of actions (static)
    """
    del action  # unused, as in the reference module

    B, in_dim = state.shape
    fc1_dims = prepared.w1.shape[1]
    fc2_dims = prepared.w2.shape[1]
    out_pad = prepared.w3p.shape[1]

    # Batch tile: multiple of 8, large by default (grid-step overhead ~0.35us),
    # but capped at ceil(B/2) so B >= 16 always yields >= 2 grid steps and the
    # "parallel" batch axis can split across v7x's two TensorCores.
    tm = _round_up(min(block_batch, B), SUBLANE)
    if B >= 2 * SUBLANE:
        tm = min(tm, _round_up(pl.cdiv(B, 2), SUBLANE))
    grid = (pl.cdiv(B, tm),)   # ragged last tile: Mosaic masks its reads/writes

    def resident(shape):
        # Constant block index -> weight / param stays VMEM-resident across
        # grid steps (DMA'd once).
        # TODO(synk): if fc dims grow to 1k-4k, add pipeline_mode=pl.Buffered(1)
        # and bf16 weights to fit v7x's 32 MiB scoped-VMEM default.
        return pl.BlockSpec(shape, lambda i: (0, 0))

    return pl.pallas_call(
        actor_kernel,
        out_shape=jax.ShapeDtypeStruct((B, n_actions), jnp.float32),
        grid=grid,
        in_specs=[
            pl.BlockSpec((tm, in_dim), lambda i: (i, 0)),      # state tile
            resident((in_dim, fc1_dims)),                      # w1
            resident((1, fc1_dims)),                           # b1
            resident((1, fc1_dims)),                           # gamma1
            resident((1, fc1_dims)),                           # beta1
            resident((fc1_dims, fc2_dims)),                    # w2
            resident((1, fc2_dims)),                           # b2
            resident((1, fc2_dims)),                           # gamma2
            resident((1, fc2_dims)),                           # beta2
            resident((fc2_dims, out_pad)),                     # w3 (lane-padded)
            resident((1, out_pad)),                            # b3 (lane-padded)
        ],
        out_specs=pl.BlockSpec((tm, n_actions), lambda i: (i, 0)),
        compiler_params=pltpu.CompilerParams(
            dimension_semantics=("parallel",),                 # megacore on v7x
        ),
    )(state,
      prepared.w1, prepared.b1, prepared.g1, prepared.be1,
      prepared.w2, prepared.b2, prepared.g2, prepared.be2,
      prepared.w3p, prepared.b3p)


def init_actor_params(key, input_dim, fc1_dims, fc2_dims, n_actions):
    """Deterministic synthetic init mirroring the module's uniform ranges.

    Weights stored pre-transposed as [in, out]; biases / LN params as [1, out].
    """
    k = jax.random.split(key, 6)
    f1 = 1.0 / math.sqrt(fc1_dims)
    f2 = 1.0 / math.sqrt(fc2_dims)
    f3 = 0.003

    w1 = jax.random.uniform(k[0], (input_dim, fc1_dims), jnp.float32, -f1, f1)
    b1 = jax.random.uniform(k[1], (1, fc1_dims), jnp.float32, -f1, f1)
    w2 = jax.random.uniform(k[2], (fc1_dims, fc2_dims), jnp.float32, -f2, f2)
    b2 = jax.random.uniform(k[3], (1, fc2_dims), jnp.float32, -f2, f2)
    w3 = jax.random.uniform(k[4], (fc2_dims, n_actions), jnp.float32, -f3, f3)
    b3 = jax.random.uniform(k[5], (1, n_actions), jnp.float32, -f3, f3)

    # LayerNorm defaults: weight=1, bias=0
    g1 = jnp.ones((1, fc1_dims), jnp.float32)
    be1 = jnp.zeros((1, fc1_dims), jnp.float32)
    g2 = jnp.ones((1, fc2_dims), jnp.float32)
    be2 = jnp.zeros((1, fc2_dims), jnp.float32)

    return ActorParams(w1, b1, g1, be1, w2, b2, g2, be2, w3, b3)


def actor_forward_ref(state, params: ActorParams):
    """Pure-JAX f32 reference (matches the PyTorch module)."""
    w1, b1, g1, be1, w2, b2, g2, be2, w3, b3 = params

    def ln(h, g, b):
        m = jnp.mean(h, axis=-1, keepdims=True)
        c = h - m
        v = jnp.mean(c * c, axis=-1, keepdims=True)
        return c * jax.lax.rsqrt(v + LN_EPS) * g + b

    h = jnp.maximum(ln(state @ w1 + b1, g1, be1), 0.0)
    h = jnp.maximum(ln(h @ w2 + b2, g2, be2), 0.0)
    return jnp.tanh(h @ w3 + b3)


if __name__ == "__main__":
    # Small shapes consistent with the module: state is [batch, input_dim].
    input_dim = 16
    fc1_dims = 32
    fc2_dims = 32
    n_actions = 4

    key = jax.random.PRNGKey(0)
    k_state, k_action, k_params, k_state2 = jax.random.split(key, 4)
    params = init_actor_params(k_params, input_dim, fc1_dims, fc2_dims, n_actions)

    # One-time parameter prep (outside the per-call hot path).
    prep_f32 = jax.tree_util.tree_map(
        jax.block_until_ready, prepare_actor_params(params, use_bf16_matmul=False))
    prep_bf16 = jax.tree_util.tree_map(
        jax.block_until_ready, prepare_actor_params(params, use_bf16_matmul=True))

    # --- tiny batch (B=2): single ragged tile, f32 path ----------------------
    batch = 2
    state = jax.random.normal(k_state, (batch, input_dim), jnp.float32)
    action = jax.random.normal(k_action, (batch, n_actions), jnp.float32)  # unused

    out = jax.block_until_ready(actor_forward(state, action, prep_f32, n_actions))
    ref = actor_forward_ref(state, params)
    assert out.shape == (batch, n_actions)
    assert jnp.allclose(out, ref, atol=1e-5, rtol=1e-5), "f32 mismatch (B=2)"

    # --- larger ragged batch (B=300): 2 grid steps (tm=152), no pad, f32 ----
    batch2 = 300
    state2 = jax.random.normal(k_state2, (batch2, input_dim), jnp.float32)
    action2 = jnp.zeros((batch2, n_actions), jnp.float32)
    out2 = jax.block_until_ready(actor_forward(state2, action2, prep_f32, n_actions))
    ref2 = actor_forward_ref(state2, params)
    assert out2.shape == (batch2, n_actions)
    assert jnp.allclose(out2, ref2, atol=1e-5, rtol=1e-5), "f32 mismatch (B=300)"

    # --- bf16 MXU-operand path (all TPU gens); f32 LN/tanh, looser tolerance -
    out3 = jax.block_until_ready(actor_forward(state2, action2, prep_bf16, n_actions))
    assert out3.shape == (batch2, n_actions)
    assert jnp.allclose(out3, ref2, atol=2e-2, rtol=2e-2), "bf16 mismatch (B=300)"

    print("KERNEL_OK")
</pallas_src>

<mosaic_0001>
module attributes {stable_mosaic.version = 11 : i64} {
  func.func @actor_kernel(%arg0: i32, %arg1: memref<8x16xf32, #tpu.memory_space<vmem>>, %arg2: memref<16x32xf32, #tpu.memory_space<vmem>>, %arg3: memref<1x32xf32, #tpu.memory_space<vmem>>, %arg4: memref<1x32xf32, #tpu.memory_space<vmem>>, %arg5: memref<1x32xf32, #tpu.memory_space<vmem>>, %arg6: memref<32x32xf32, #tpu.memory_space<vmem>>, %arg7: memref<1x32xf32, #tpu.memory_space<vmem>>, %arg8: memref<1x32xf32, #tpu.memory_space<vmem>>, %arg9: memref<1x32xf32, #tpu.memory_space<vmem>>, %arg10: memref<32x128xf32, #tpu.memory_space<vmem>>, %arg11: memref<1x128xf32, #tpu.memory_space<vmem>>, %arg12: memref<8x4xf32, #tpu.memory_space<vmem>>) attributes {dimension_semantics = [#tpu.dimension_semantics<parallel>], iteration_bounds = array<i64: 1>, scalar_prefetch = 0 : i64, scratch_operands = 0 : i64, tpu.core_type = #tpu.core_type<tc>, window_params = [{transform_indices = @transform_0, window_bounds = array<i64: 8, 16>}, {pipeline_mode = #tpu.pipeline_mode<synchronous>, transform_indices = @transform_1, window_bounds = array<i64: 16, 32>}, {pipeline_mode = #tpu.pipeline_mode<synchronous>, transform_indices = @transform_2, window_bounds = array<i64: 1, 32>}, {pipeline_mode = #tpu.pipeline_mode<synchronous>, transform_indices = @transform_3, window_bounds = array<i64: 1, 32>}, {pipeline_mode = #tpu.pipeline_mode<synchronous>, transform_indices = @transform_4, window_bounds = array<i64: 1, 32>}, {pipeline_mode = #tpu.pipeline_mode<synchronous>, transform_indices = @transform_5, window_bounds = array<i64: 32, 32>}, {pipeline_mode = #tpu.pipeline_mode<synchronous>, transform_indices = @transform_6, window_bounds = array<i64: 1, 32>}, {pipeline_mode = #tpu.pipeline_mode<synchronous>, transform_indices = @transform_7, window_bounds = array<i64: 1, 32>}, {pipeline_mode = #tpu.pipeline_mode<synchronous>, transform_indices = @transform_8, window_bounds = array<i64: 1, 32>}, {pipeline_mode = #tpu.pipeline_mode<synchronous>, transform_indices = @transform_9, window_bounds = array<i64: 32, 128>}, {pipeline_mode = #tpu.pipeline_mode<synchronous>, transform_indices = @transform_10, window_bounds = array<i64: 1, 128>}, {transform_indices = @transform_11, window_bounds = array<i64: 8, 4>}]} {
    %c0 = arith.constant 0 : index
    %c0_0 = arith.constant 0 : index
    %0 = vector.load %arg3[%c0, %c0_0] : memref<1x32xf32, #tpu.memory_space<vmem>>, vector<1x32xf32>
    %c0_1 = arith.constant 0 : index
    %c0_2 = arith.constant 0 : index
    %1 = vector.load %arg4[%c0_1, %c0_2] : memref<1x32xf32, #tpu.memory_space<vmem>>, vector<1x32xf32>
    %c0_3 = arith.constant 0 : index
    %c0_4 = arith.constant 0 : index
    %2 = vector.load %arg5[%c0_3, %c0_4] : memref<1x32xf32, #tpu.memory_space<vmem>>, vector<1x32xf32>
    %c0_5 = arith.constant 0 : index
    %c0_6 = arith.constant 0 : index
    %3 = vector.load %arg7[%c0_5, %c0_6] : memref<1x32xf32, #tpu.memory_space<vmem>>, vector<1x32xf32>
    %c0_7 = arith.constant 0 : index
    %c0_8 = arith.constant 0 : index
    %4 = vector.load %arg8[%c0_7, %c0_8] : memref<1x32xf32, #tpu.memory_space<vmem>>, vector<1x32xf32>
    %c0_9 = arith.constant 0 : index
    %c0_10 = arith.constant 0 : index
    %5 = vector.load %arg9[%c0_9, %c0_10] : memref<1x32xf32, #tpu.memory_space<vmem>>, vector<1x32xf32>
    %c0_11 = arith.constant 0 : index
    %c0_12 = arith.constant 0 : index
    %6 = vector.load %arg11[%c0_11, %c0_12] : memref<1x128xf32, #tpu.memory_space<vmem>>, vector<1x128xf32>
    %c0_13 = arith.constant 0 : index
    %c0_14 = arith.constant 0 : index
    %7 = vector.load %arg1[%c0_13, %c0_14] : memref<8x16xf32, #tpu.memory_space<vmem>>, vector<8x16xf32>
    %c0_15 = arith.constant 0 : index
    %c0_16 = arith.constant 0 : index
    %8 = vector.load %arg2[%c0_15, %c0_16] : memref<16x32xf32, #tpu.memory_space<vmem>>, vector<16x32xf32>
    %cst = arith.constant dense<0.000000e+00> : vector<8x32xf32>
    %9 = tpu.matmul %7, %8, %cst {dimension_numbers = #tpu.dot_dimension_numbers<[1], [0], [0], [1], [0, 0, 1, 1], [], []>} : vector<8x16xf32>, vector<16x32xf32>, vector<8x32xf32> -> vector<8x32xf32>
    %10 = vector.broadcast %0 : vector<1x32xf32> to vector<8x32xf32>
    %11 = arith.addf %9, %10 : vector<8x32xf32>
    %cst_17 = arith.constant dense<0.000000e+00> : vector<8xf32>
    %12 = vector.multi_reduction <add>, %11, %cst_17 [1] : vector<8x32xf32> to vector<8xf32>
    %13 = vector.shape_cast %12 : vector<8xf32> to vector<8x1xf32>
    %cst_18 = arith.constant 3.200000e+01 : f32
    %14 = vector.broadcast %cst_18 : f32 to vector<8x1xf32>
    %15 = arith.divf %13, %14 : vector<8x1xf32>
    %16 = vector.broadcast %15 : vector<8x1xf32> to vector<8x32xf32>
    %17 = arith.subf %11, %16 : vector<8x32xf32>
    %18 = arith.mulf %17, %17 : vector<8x32xf32>
    %cst_19 = arith.constant dense<0.000000e+00> : vector<8xf32>
    %19 = vector.multi_reduction <add>, %18, %cst_19 [1] : vector<8x32xf32> to vector<8xf32>
    %20 = vector.shape_cast %19 : vector<8xf32> to vector<8x1xf32>
    %cst_20 = arith.constant 3.200000e+01 : f32
    %21 = vector.broadcast %cst_20 : f32 to vector<8x1xf32>
    %22 = arith.divf %20, %21 : vector<8x1xf32>
    %cst_21 = arith.constant 9.99999974E-6 : f32
    %23 = vector.broadcast %cst_21 : f32 to vector<8x1xf32>
    %24 = arith.addf %22, %23 : vector<8x1xf32>
    %25 = math.rsqrt %24 : vector<8x1xf32>
    %26 = vector.broadcast %25 : vector<8x1xf32> to vector<8x32xf32>
    %27 = arith.mulf %17, %26 : vector<8x32xf32>
    %28 = vector.broadcast %1 : vector<1x32xf32> to vector<8x32xf32>
    %29 = arith.mulf %27, %28 : vector<8x32xf32>
    %30 = vector.broadcast %2 : vector<1x32xf32> to vector<8x32xf32>
    %31 = arith.addf %29, %30 : vector<8x32xf32>
    %cst_22 = arith.constant 0.000000e+00 : f32
    %32 = vector.broadcast %cst_22 : f32 to vector<8x32xf32>
    %33 = arith.maximumf %31, %32 : vector<8x32xf32>
    %c0_23 = arith.constant 0 : index
    %c0_24 = arith.constant 0 : index
    %34 = vector.load %arg6[%c0_23, %c0_24] : memref<32x32xf32, #tpu.memory_space<vmem>>, vector<32x32xf32>
    %cst_25 = arith.constant dense<0.000000e+00> : vector<8x32xf32>
    %35 = tpu.matmul %33, %34, %cst_25 {dimension_numbers = #tpu.dot_dimension_numbers<[1], [0], [0], [1], [0, 0, 1, 1], [], []>} : vector<8x32xf32>, vector<32x32xf32>, vector<8x32xf32> -> vector<8x32xf32>
    %36 = vector.broadcast %3 : vector<1x32xf32> to vector<8x32xf32>
    %37 = arith.addf %35, %36 : vector<8x32xf32>
    %cst_26 = arith.constant dense<0.000000e+00> : vector<8xf32>
    %38 = vector.multi_reduction <add>, %37, %cst_26 [1] : vector<8x32xf32> to vector<8xf32>
    %39 = vector.shape_cast %38 : vector<8xf32> to vector<8x1xf32>
    %cst_27 = arith.constant 3.200000e+01 : f32
    %40 = vector.broadcast %cst_27 : f32 to vector<8x1xf32>
    %41 = arith.divf %39, %40 : vector<8x1xf32>
    %42 = vector.broadcast %41 : vector<8x1xf32> to vector<8x32xf32>
    %43 = arith.subf %37, %42 : vector<8x32xf32>
    %44 = arith.mulf %43, %43 : vector<8x32xf32>
    %cst_28 = arith.constant dense<0.000000e+00> : vector<8xf32>
    %45 = vector.multi_reduction <add>, %44, %cst_28 [1] : vector<8x32xf32> to vector<8xf32>
    %46 = vector.shape_cast %45 : vector<8xf32> to vector<8x1xf32>
    %cst_29 = arith.constant 3.200000e+01 : f32
    %47 = vector.broadcast %cst_29 : f32 to vector<8x1xf32>
    %48 = arith.divf %46, %47 : vector<8x1xf32>
    %cst_30 = arith.constant 9.99999974E-6 : f32
    %49 = vector.broadcast %cst_30 : f32 to vector<8x1xf32>
    %50 = arith.addf %48, %49 : vector<8x1xf32>
    %51 = math.rsqrt %50 : vector<8x1xf32>
    %52 = vector.broadcast %51 : vector<8x1xf32> to vector<8x32xf32>
    %53 = arith.mulf %43, %52 : vector<8x32xf32>
    %54 = vector.broadcast %4 : vector<1x32xf32> to vector<8x32xf32>
    %55 = arith.mulf %53, %54 : vector<8x32xf32>
    %56 = vector.broadcast %5 : vector<1x32xf32> to vector<8x32xf32>
    %57 = arith.addf %55, %56 : vector<8x32xf32>
    %cst_31 = arith.constant 0.000000e+00 : f32
    %58 = vector.broadcast %cst_31 : f32 to vector<8x32xf32>
    %59 = arith.maximumf %57, %58 : vector<8x32xf32>
    %c0_32 = arith.constant 0 : index
    %c0_33 = arith.constant 0 : index
    %60 = vector.load %arg10[%c0_32, %c0_33] : memref<32x128xf32, #tpu.memory_space<vmem>>, vector<32x128xf32>
    %cst_34 = arith.constant dense<0.000000e+00> : vector<8x128xf32>
    %61 = tpu.matmul %59, %60, %cst_34 {dimension_numbers = #tpu.dot_dimension_numbers<[1], [0], [0], [1], [0, 0, 1, 1], [], []>} : vector<8x32xf32>, vector<32x128xf32>, vector<8x128xf32> -> vector<8x128xf32>
    %62 = vector.broadcast %6 : vector<1x128xf32> to vector<8x128xf32>
    %63 = arith.addf %61, %62 : vector<8x128xf32>
    %64 = vector.extract_strided_slice %63 {offsets = [0, 0], sizes = [8, 4], strides = [1, 1]} : vector<8x128xf32> to vector<8x4xf32>
    %65 = math.tanh %64 : vector<8x4xf32>
    %c0_35 = arith.constant 0 : index
    %c0_36 = arith.constant 0 : index
    %66 = vector.load %arg12[%c0_35, %c0_36] : memref<8x4xf32, #tpu.memory_space<vmem>>, vector<8x4xf32>
    tpu.vector_store %arg12[%c0_35, %c0_36], %65 {strides = array<i32>} : memref<8x4xf32, #tpu.memory_space<vmem>>, vector<8x4xf32>,
    return
  }
  func.func @transform_0(%arg0: i32) -> (i32, i32) {
    %c0_i32 = arith.constant 0 : i32
    %c0_i32_0 = arith.constant 0 : i32
    return %arg0, %c0_i32 : i32, i32
  }
  func.func @transform_1(%arg0: i32) -> (i32, i32) {
    %c0_i32 = arith.constant 0 : i32
    %c0_i32_0 = arith.constant 0 : i32
    %c0_i32_1 = arith.constant 0 : i32
    return %c0_i32, %c0_i32_0 : i32, i32
  }
  func.func @transform_2(%arg0: i32) -> (i32, i32) {
    %c0_i32 = arith.constant 0 : i32
    %c0_i32_0 = arith.constant 0 : i32
    %c0_i32_1 = arith.constant 0 : i32
    return %c0_i32, %c0_i32_0 : i32, i32
  }
  func.func @transform_3(%arg0: i32) -> (i32, i32) {
    %c0_i32 = arith.constant 0 : i32
    %c0_i32_0 = arith.constant 0 : i32
    %c0_i32_1 = arith.constant 0 : i32
    return %c0_i32, %c0_i32_0 : i32, i32
  }
  func.func @transform_4(%arg0: i32) -> (i32, i32) {
    %c0_i32 = arith.constant 0 : i32
    %c0_i32_0 = arith.constant 0 : i32
    %c0_i32_1 = arith.constant 0 : i32
    return %c0_i32, %c0_i32_0 : i32, i32
  }
  func.func @transform_5(%arg0: i32) -> (i32, i32) {
    %c0_i32 = arith.constant 0 : i32
    %c0_i32_0 = arith.constant 0 : i32
    %c0_i32_1 = arith.constant 0 : i32
    return %c0_i32, %c0_i32_0 : i32, i32
  }
  func.func @transform_6(%arg0: i32) -> (i32, i32) {
    %c0_i32 = arith.constant 0 : i32
    %c0_i32_0 = arith.constant 0 : i32
    %c0_i32_1 = arith.constant 0 : i32
    return %c0_i32, %c0_i32_0 : i32, i32
  }
  func.func @transform_7(%arg0: i32) -> (i32, i32) {
    %c0_i32 = arith.constant 0 : i32
    %c0_i32_0 = arith.constant 0 : i32
    %c0_i32_1 = arith.constant 0 : i32
    return %c0_i32, %c0_i32_0 : i32, i32
  }
  func.func @transform_8(%arg0: i32) -> (i32, i32) {
    %c0_i32 = arith.constant 0 : i32
    %c0_i32_0 = arith.constant 0 : i32
    %c0_i32_1 = arith.constant 0 : i32
    return %c0_i32, %c0_i32_0 : i32, i32
  }
  func.func @transform_9(%arg0: i32) -> (i32, i32) {
    %c0_i32 = arith.constant 0 : i32
    %c0_i32_0 = arith.constant 0 : i32
    %c0_i32_1 = arith.constant 0 : i32
    return %c0_i32, %c0_i32_0 : i32, i32
  }
  func.func @transform_10(%arg0: i32) -> (i32, i32) {
    %c0_i32 = arith.constant 0 : i32
    %c0_i32_0 = arith.constant 0 : i32
    %c0_i32_1 = arith.constant 0 : i32
    return %c0_i32, %c0_i32_0 : i32, i32
  }
  func.func @transform_11(%arg0: i32) -> (i32, i32) {
    %c0_i32 = arith.constant 0 : i32
    %c0_i32_0 = arith.constant 0 : i32
    return %arg0, %c0_i32 : i32, i32
  }
}

</mosaic_0001>

<bundles_post_ra>
// kernel: actor_forward.1
= control target key start
LH: loop header
LB: loop body
LE: loop exit
PB: predicated region body
PF: predicated region fallthrough
CT: control target
= control target key end

     0   :  { %16 = vsyncpa [#allocation3], 0  ;;  %s748_s0 = inlined_call_operand.hbm [shape: f32[2,16], index: 0, kind: input, shape index: {}]   ;;  %s749_s1 = inlined_call_operand.hbm [shape: f32[16,32], index: 1, kind: input, shape index: {}]   ;;  %s750_s2 = inlined_call_operand.vmem [shape: f32[1,32], index: 2, kind: input, shape index: {}]   ;;  %s751_s3 = inlined_call_operand.vmem [shape: f32[1,32], index: 3, kind: input, shape index: {}]   ;;  %s752_s4 = inlined_call_operand.vmem [shape: f32[1,32], index: 4, kind: input, shape index: {}]   ;;  %s753_s5 = inlined_call_operand.hbm [shape: f32[32,32], index: 5, kind: input, shape index: {}]   ;;  %s754_s6 = inlined_call_operand.vmem [shape: f32[1,32], index: 6, kind: input, shape index: {}]   ;;  %s755_s7 = inlined_call_operand.vmem [shape: f32[1,32], index: 7, kind: input, shape index: {}]   ;;  %s756_s8 = inlined_call_operand.vmem [shape: f32[1,32], index: 8, kind: input, shape index: {}]   ;;  %s757_s9 = inlined_call_operand.hbm [shape: f32[32,128], index: 9, kind: input, shape index: {}]   ;;  %s758_s10 = inlined_call_operand.vmem [shape: f32[1,128], index: 10, kind: input, shape index: {}]   ;;  %s759_s11 = inlined_call_operand.hbm [shape: f32[2,4], index: 11, kind: output, shape index: {}]  }
   0x1   :  { %17 = vsyncpa [#allocation6], 0 }
   0x2   :  { %18 = vsyncpa [#allocation9], 0 }
   0x3   :  { %19 = vsyncpa [#allocation4], 0 }
   0x4   :  { %24 = vsyncadd [#allocation3], 96  ;;  %s607_s17 = smov [#allocation5]  }
   0x5   :  { %s37_s18 = sshll.u32 %s607_s17, 4  ;;  %s38_s18 = int_to_ptr.vmem [resolvable:$true] %s37_s18 }
   0x6   :  { %s507_s19 = scalar_lea.vmem %s38_s18, 256  ;;  %p512_p1 = scmp.lt.s32.totalorder %s38_s18, %s38_s18 }
   0x7   :  { %p508_p0 = scmp.ne.s32.totalorder %s38_s18, %s507_s19  ;;  %p513_p2 = scmp.lt.s32.totalorder %s507_s19, %s507_s19 }
   0x9   :  { %p514_p3 = por %p513_p2, %p512_p1 }
   0xb   :  { %p515_p4 = pnand %p514_p3, %p508_p0 }
   0xd   :  { %518 = shalt.err (!%p515_p4)
}
   0xe   :  { %s608_s20 = smov 128   ;;  %s609_s21 = smov 8  }
   0xf   :  { %43 = dma.hbm_to_vmem [thread:$0]  %s749_s1, 256, %s38_s18, [#allocation6], %s608_s20, %s608_s20, %s609_s21  }
  0x10   :  { %s610_s24 = smov [#allocation2]  }
  0x11   :  { %s25_s25 = sshll.u32 %s610_s24, 4  ;;  %s26_s25 = int_to_ptr.vmem [resolvable:$true] %s25_s25 }
  0x12   :  { %s527_s26 = scalar_lea.vmem %s26_s25, 32  ;;  %s531_s27 = scalar_lea.vmem %s26_s25, 128 }
  0x13   :  { %p528_p5 = scmp.ne.s32.totalorder %s26_s25, %s527_s26  ;;  %p532_p6 = scmp.lt.s32.totalorder %s26_s25, %s26_s25 }
  0x14   :  { %p533_p7 = scmp.lt.s32.totalorder %s531_s27, %s527_s26 }
  0x16   :  { %p534_p8 = por %p533_p7, %p532_p6 }
  0x18   :  { %p535_p9 = pnand %p534_p8, %p528_p5 }
  0x1a   :  { %538 = shalt.err (!%p535_p9)
}
  0x1b   :  { %s611_s28 = smov 32   ;;  %s612_s29 = smov 2  }
  0x1c   :  { %31 = dma.hbm_to_vmem [thread:$0]  %s748_s0, 32, %s26_s25, [#allocation3], %s611_s28, %s611_s28, %s612_s29  }
  0x1d   :  { %s613_s1 = smov [#allocation7]   ;;  %s614_s14 = smov [#allocation8]  }
  0x1e   :  { %s55_s13 = sshll.u32 %s613_s1, 4  ;;  %s73_s15 = sshll.u32 %s614_s14, 4  ;;  %s56_s13 = int_to_ptr.vmem [resolvable:$true] %s55_s13  ;;  %s74_s15 = int_to_ptr.vmem [resolvable:$true] %s73_s15 }
  0x1f   :  { %s547_s16 = scalar_lea.vmem %s56_s13, 512  ;;  %p552_p11 = scmp.lt.s32.totalorder %s56_s13, %s56_s13 }
  0x20   :  { %p548_p10 = scmp.ne.s32.totalorder %s56_s13, %s547_s16  ;;  %p553_p12 = scmp.lt.s32.totalorder %s547_s16, %s547_s16 }
  0x22   :  { %p554_p13 = por %p553_p12, %p552_p11 }
  0x24   :  { %p555_p0 = pnand %p554_p13, %p548_p10 }
  0x26   :  { %558 = shalt.err (!%p555_p0)
}
  0x27   :  { %61 = dma.hbm_to_vmem [thread:$0]  %s753_s5, 512, %s56_s13, [#allocation6], %s608_s20, %s608_s20, %s609_s21  }
  0x28   :  { %s567_s0 = scalar_lea.vmem %s74_s15, 512  ;;  %p572_p2 = scmp.lt.s32.totalorder %s74_s15, %s74_s15 }
  0x29   :  { %p568_p1 = scmp.ne.s32.totalorder %s74_s15, %s567_s0  ;;  %p573_p3 = scmp.lt.s32.totalorder %s567_s0, %s567_s0 }
  0x2b   :  { %p574_p4 = por %p573_p3, %p572_p2 }
  0x2d   :  { %p575_p5 = pnand %p574_p4, %p568_p1 }
  0x2f   :  { %578 = shalt.err (!%p575_p5)
}
  0x30   :  { %79 = dma.hbm_to_vmem [thread:$0]  %s757_s9, 512, %s74_s15, [#allocation9], %s608_s20, %s608_s20, %s609_s21  }
  0x31   :  { %599 = dma.done.wait [#allocation3], 128  }
  0x32   :  { %600 = vsyncadd [#allocation3], 4294967168 }
  0x33   :  { %601 = dma.done.wait [#allocation6], 768  }
  0x34   :  { %602 = vsyncadd [#allocation6], 4294966528 }
  0x35   :  { %603 = dma.done.wait [#allocation9], 512  }
  0x36   :  { %604 = vsyncadd [#allocation9], 4294966784  ;;  %v615_v0 = vmov 0.0   ;;  %vm616_vm0 = vmmov 0   ;;  %v103_v1 = vld [vmem:[#allocation5 + $0x8] sm:$0xff]  ;;  %v102_v2 = vld [vmem:[#allocation5] sm:$0xff] }
  0x37   :  { %453 = vmatprep.subr.mxu0 %v615_v0  ;;  %457 = vmatprep.mubr.msk.f32.mxu0 %vm616_vm0, %v615_v0  ;;  %v101_v3 = vld [vmem:[#allocation2] sm:$0xff]  ;;  %vm110_vm1 = vcmask 130048   ;;  %vm184_vm2 = vcmask 261120   ;;  %v217_v14 = vld [vmem:[#allocation7 + $0x18] sm:$0xff]  ;;  %v216_v15 = vld [vmem:[#allocation7 + $0x10] sm:$0xff]  ;;  %vm409_vm3 = vcmask 31744  }
  0x38   :  { %460 = vmatprep.subr.mxu1 %v615_v0  ;;  %468 = vmatprep.mubr.msk.f32.mxu1 %vm616_vm0, %v615_v0  ;;  %v430_v4 = vld [vmem:[%s750_s2] ss:$0 sm:$0xff]  ;;  %v214_v17 = vld [vmem:[#allocation7] sm:$0xff]  ;;  %v328_v38 = vld [vmem:[#allocation8 + $0x18] sm:$0xff] }
  0x39   :  { %454 = vmatpush3.msra.mxu0 %v103_v1  ;;  %461 = vmatpush3.msra.mxu1 %v217_v14  ;;  %v215_v16 = vld [vmem:[#allocation7 + $0x8] sm:$0xff]  ;;  %v327_v39 = vld [vmem:[#allocation8 + $0x10] sm:$0xff]  ;;  %v325_v41 = vld [vmem:[#allocation8] sm:$0xff] }
  0x3a   :  { %455 = vmatprep.subr.mxu0 %v615_v0  ;;  %462 = vmatprep.subr.mxu1 %v615_v0  ;;  %v432_v22 = vld [vmem:[%s751_s3] ss:$0 sm:$0xff] }
  0x3b   :  { %456 = vmatpush3.msra.mxu0 %v102_v2  ;;  %463 = vmatpush3.msra.mxu1 %v216_v15  ;;  %v433_v24 = vld [vmem:[%s752_s4] ss:$0 sm:$0xff] }
  0x3c   :  { %458 = vmatmul.mubr.msk.f32.vlgmr.msra.gmra.mxu0 %vm110_vm1, %v101_v3  ;;  %471 = vmatprep.subr.mxu0 %v615_v0  ;;  %v434_v28 = vld [vmem:[%s754_s6] ss:$0 sm:$0xff] }
  0x3d   :  { %479 = vmatprep.mubr.msk.f32.mxu0 %vm616_vm0, %v615_v0  ;;  %464 = vmatprep.subr.mxu1 %v615_v0  ;;  %v326_v40 = vld [vmem:[#allocation8 + $0x8] sm:$0xff] }
  0x3e   :  { %465 = vmatpush3.msra.mxu1 %v215_v16  ;;  %472 = vmatpush3.msra.mxu0 %v328_v38  ;;  %v436_v46 = vld [vmem:[%s755_s7] ss:$0 sm:$0xff] }
  0x3f   :  { %466 = vmatprep.subr.mxu1 %v615_v0  ;;  %473 = vmatprep.subr.mxu0 %v615_v0  ;;  %v437_v48 = vld [vmem:[%s756_s8] ss:$0 sm:$0xff] }
  0x40   :  { %467 = vmatpush3.msra.mxu1 %v214_v17  ;;  %474 = vmatpush3.msra.mxu0 %v327_v39  ;;  %v438_v52 = vld [vmem:[%s758_s10] ss:$0 sm:$0xff] }
  0x41   :  { %475 = vmatprep.subr.mxu0 %v615_v0 }
  0x42   :  { %476 = vmatpush3.msra.mxu0 %v326_v40 }
  0x43   :  { %477 = vmatprep.subr.mxu0 %v615_v0 }
  0x44   :  { %478 = vmatpush3.msra.mxu0 %v325_v41 }
  0xfc   :  { %v180_v5 = vpop.f32.mrf.mxu0 }
  0xfd   :  { %v181_v6 = vadd.f32 %v430_v4, %v180_v5 }
  0xfe   :  { %v459_v7 = vpop.f32.mrf.mxu0 }
  0xff   :  { %v185_v8 = vsel %vm184_vm2, %v181_v6, 0.0 }
 0x100   :  { %186 = vadd.xlane.f32.xlu0 %v185_v8 }
 0x189   :  { %v187_v9 = vpop.xlane.xlu0 %186 }
 0x18a   :  { %v189_v10 = vmul.f32 0.03125, %v187_v9 }
 0x18c   :  { %v190_v11 = vsub.f32 %v181_v6, %v189_v10 }
 0x18e   :  { %v191_v12 = vmul.f32 %v190_v11, %v190_v11 }
 0x190   :  { %v192_v13 = vsel %vm184_vm2, %v191_v12, 0.0 }
 0x191   :  { %193 = vadd.xlane.f32.xlu0 %v192_v13 }
 0x21a   :  { %v194_v18 = vpop.xlane.xlu0 %193 }
 0x21b   :  { %v195_v19 = vmul.f32 0.03125, %v194_v18 }
 0x21d   :  { %v196_v20 = vadd.f32 1e-05, %v195_v19 }
 0x21f   :  { %493 = vrsqrt.f32 %v196_v20 }
 0x22c   :  { %v494_v21 = vpop.eup %493 }
 0x22d   :  { %v198_v23 = vmul.f32 %v494_v21, %v190_v11 }
 0x22f   :  { %v205_v25 = vmul.f32 %v432_v22, %v198_v23 }
 0x231   :  { %v212_v26 = vadd.f32 %v433_v24, %v205_v25 }
 0x233   :  { %v213_v27 = vmax.f32 %v212_v26, 0.0 }
 0x235   :  { %469 = vmatmul.mubr.msk.f32.vlgmr.msra.gmra.mxu1 %vm184_vm2, %v213_v27 }
 0x2f5   :  { %v293_v29 = vpop.f32.mrf.mxu1 }
 0x2f6   :  { %v294_v30 = vadd.f32 %v434_v28, %v293_v29 }
 0x2f7   :  { %v470_v31 = vpop.f32.mrf.mxu1 }
 0x2f8   :  { %v297_v32 = vsel %vm184_vm2, %v294_v30, 0.0 }
 0x2f9   :  { %298 = vadd.xlane.f32.xlu1 %v297_v32 }
 0x382   :  { %v299_v33 = vpop.xlane.xlu1 %298 }
 0x383   :  { %v300_v34 = vmul.f32 0.03125, %v299_v33 }
 0x385   :  { %v301_v35 = vsub.f32 %v294_v30, %v300_v34 }
 0x387   :  { %v302_v36 = vmul.f32 %v301_v35, %v301_v35 }
 0x389   :  { %v303_v37 = vsel %vm184_vm2, %v302_v36, 0.0 }
 0x38a   :  { %304 = vadd.xlane.f32.xlu1 %v303_v37 }
 0x413   :  { %v305_v42 = vpop.xlane.xlu1 %304 }
 0x414   :  { %v306_v43 = vmul.f32 0.03125, %v305_v42 }
 0x416   :  { %v307_v44 = vadd.f32 1e-05, %v306_v43 }
 0x418   :  { %495 = vrsqrt.f32 %v307_v44 }
 0x425   :  { %v496_v45 = vpop.eup %495 }
 0x426   :  { %v309_v47 = vmul.f32 %v496_v45, %v301_v35 }
 0x428   :  { %v316_v49 = vmul.f32 %v436_v46, %v309_v47 }
 0x42a   :  { %v323_v50 = vadd.f32 %v437_v48, %v316_v49 }
 0x42c   :  { %v324_v51 = vmax.f32 %v323_v50, 0.0 }
 0x42e   :  { %480 = vmatmul.mubr.msk.f32.vlgmr.msra.gmra.mxu0 %vm184_vm2, %v324_v51 }
 0x4ee   :  { %v404_v53 = vpop.f32.mrf.mxu0 }
 0x4ef   :  { %v405_v54 = vadd.f32 %v438_v52, %v404_v53 }
 0x4f0   :  { %v481_v55 = vpop.f32.mrf.mxu0 }
 0x4f1   :  { %497 = vtanh.f32 %v405_v54 }
 0x4fe   :  { %v498_v56 = vpop.eup %497 }
 0x4ff   :  { %410 = vst.msk [vmem:[#allocation10] sm:$0xff] %vm409_vm3, %v498_v56 }
 0x500   :  { %415 = vsyncadd [#allocation4], 96  ;;  %s617_s7 = smov [#allocation10]  }
 0x501   :  { %s416_s12 = sshll.u32 %s617_s7, 4  ;;  %s417_s12 = int_to_ptr.vmem [resolvable:$true] %s416_s12 }
 0x502   :  { %s579_s8 = scalar_lea.vmem %s417_s12, 32  ;;  %s583_s1 = scalar_lea.vmem %s417_s12, 128 }
 0x503   :  { %p580_p6 = scmp.ne.s32.totalorder %s417_s12, %s579_s8  ;;  %p584_p7 = scmp.lt.s32.totalorder %s417_s12, %s417_s12 }
 0x504   :  { %p585_p8 = scmp.lt.s32.totalorder %s583_s1, %s579_s8 }
 0x506   :  { %p586_p9 = por %p585_p8, %p584_p7 }
 0x508   :  { %p587_p10 = pnand %p586_p9, %p580_p6 }
 0x50a   :  { %590 = shalt.err (!%p587_p10)
}
 0x50b   :  { %422 = dma.vmem_to_hbm [thread:$0]  %s417_s12, 32, %s759_s11, [#allocation4], %s611_s28, %s611_s28, %s612_s29  }
 0x50c   :  { %605 = dma.done.wait [#allocation4], 128  }
 0x50d   :  { %606 = vsyncadd [#allocation4], 4294967168 }
 0x50e   :  { %426 = vsyncpa [#allocation3], 1 }
 0x50f   :  { %427 = vsyncpa [#allocation6], 1 }
 0x510   :  { %428 = vsyncpa [#allocation9], 1 }
 0x511   :  { %429 = vsyncpa [#allocation4], 1 }

</bundles_post_ra>
